<compile_context>
chip_gen: v7x
topology: tpu7x:2x2x1
jax: 0.10.0
libtpu: 0.0.40
codegen_flags: <defaults>
</compile_context>

<pallas_src>
import functools
import math

import jax
import jax.numpy as jnp
from jax.experimental import pallas as pl
from jax.experimental.pallas import tpu as pltpu


def _round_up(x: int, m: int) -> int:
    return ((x + m - 1) // m) * m


def _time_embedding_kernel(t_ref, freq_ref, phase_ref, out_ref, *,
                           scale: float, groups: int):
    """Produce one (tile_r, lane_width) packed output block.

    t_ref:     (tile_r, groups)      raw time value per packed original row
    freq_ref:  (groups, lane_width)  row j holds the inv_freq pattern in lanes
                                     [j*dim, (j+1)*dim), zeros elsewhere
    phase_ref: (1, lane_width)       0 on sin lanes, pi/2 on cos lanes
    out_ref:   (tile_r, lane_width)  packed embedding rows
    """
    # Affine on the raw times in f32, matching `input * scale + 1`.
    t = t_ref[...].astype(jnp.float32) * jnp.float32(scale) + jnp.float32(1.0)

    # Expand each time value across its dim-wide lane group using the masked
    # per-group frequency rows.  Exactly one group row is non-zero per lane, so
    # the sum reproduces the exact f32 product t'[n] * inv_freq[k] (the other
    # terms add exact zeros).  This keeps every vreg 100% lane-occupied.
    acc = None
    for j in range(groups):
        term = t[:, j:j + 1] * freq_ref[j:j + 1, :]   # (tile_r,1)*(1,LW) -> (tile_r,LW)
        acc = term if acc is None else acc + term

    # cos(x) == sin(x + pi/2): single transcendental pass over the full lane
    # width, no concatenate, one full-width store.
    out_ref[...] = jnp.sin(acc + phase_ref[...]).astype(out_ref.dtype)


@functools.lru_cache(maxsize=None)
def _build_call(rows_pad: int, tile_r: int, groups: int, lane_width: int,
                scale: float, out_dtype_name: str):
    """Cached pallas_call builder (hoisted out of the per-call path)."""
    out_dtype = jnp.dtype(out_dtype_name)
    kernel = functools.partial(_time_embedding_kernel, scale=scale, groups=groups)
    grid = (rows_pad // tile_r,)
    return pl.pallas_call(
        kernel,
        out_shape=jax.ShapeDtypeStruct((rows_pad, lane_width), out_dtype),
        grid_spec=pltpu.PrefetchScalarGridSpec(
            num_scalar_prefetch=0,
            grid=grid,
            in_specs=[
                pl.BlockSpec((tile_r, groups), lambda i: (i, 0)),       # times
                pl.BlockSpec((groups, lane_width), lambda i: (0, 0)),   # freq table
                pl.BlockSpec((1, lane_width), lambda i: (0, 0)),        # phase table
            ],
            # Lane-dense output block; if output writeback is still exposed on
            # v5e one could sweep pipeline_mode=pl.Buffered(3) here.
            out_specs=pl.BlockSpec((tile_r, lane_width), lambda i: (i, 0)),
        ),
        compiler_params=pltpu.CompilerParams(
            dimension_semantics=("parallel",),   # megacore sharding on v7x
        ),
    )


def _choose_tile_rows(rows: int, lane_width: int, out_itemsize: int) -> int:
    """Pick tile rows so the double-buffered in+out blocks stay ~8 MiB."""
    in_row_bytes = 128 * 4                                   # (tile_r, g) f32 lane-pads to 128
    out_row_bytes = _round_up(lane_width, 128) * out_itemsize
    budget = 8 * 1024 * 1024
    tile = budget // (2 * (in_row_bytes + out_row_bytes))
    tile = max(8, (tile // 8) * 8)
    if rows <= 8:
        return 8
    # Keep >= 2 grid steps whenever there is enough work (v7x has 2 TCs).
    return min(tile, _round_up((rows + 1) // 2, 8))


def time_embedding(x: jax.Array, dim: int, scale: float, *,
                   out_dtype=jnp.float32) -> jax.Array:
    """JAX/Pallas equivalent of TimeEmbedding(dim, scale).forward(x)."""
    assert dim % 2 == 0 and dim >= 2, "dim must be even"
    orig_shape = x.shape
    n = int(x.size)
    assert n > 0, "empty input"

    half = dim // 2
    # Pack g original rows per 128-lane output row when dim divides 128.
    # Otherwise fall back to one row per output row (masked stores if
    # dim % 128 != 0 -- still correct, just slower; only hit for unusual dims).
    groups = 128 // dim if (dim < 128 and 128 % dim == 0) else 1
    lane_width = groups * dim

    out_dtype = jnp.dtype(out_dtype)
    rows = -(-n // groups)                       # cdiv: packed rows needed
    tile_r = _choose_tile_rows(rows, lane_width, out_dtype.itemsize)
    rows_pad = _round_up(rows, tile_r)
    n_pad = rows_pad * groups

    # Per-lane constant tables (inv_freq matches the PyTorch buffer exactly).
    inv_freq = jnp.exp(
        jnp.arange(0, dim, 2, dtype=jnp.float32) * (-math.log(10000.0) / dim))
    freq_row = jnp.concatenate([inv_freq, inv_freq])               # (dim,)
    phase_row = jnp.concatenate(
        [jnp.zeros((half,), jnp.float32),
         jnp.full((half,), math.pi / 2.0, dtype=jnp.float32)])     # (dim,)
    freq_tbl = (jnp.eye(groups, dtype=jnp.float32)[:, :, None]
                * freq_row[None, None, :]).reshape(groups, lane_width)
    phase_tbl = jnp.tile(phase_row, (groups,)).reshape(1, lane_width)

    t_flat = x.reshape(-1).astype(jnp.float32)
    if n_pad != n:
        t_flat = jnp.pad(t_flat, (0, n_pad - n))                   # padded rows discarded below
    t2d = t_flat.reshape(rows_pad, groups)

    call = _build_call(rows_pad, tile_r, groups, lane_width,
                       float(scale), out_dtype.name)
    out_packed = call(t2d, freq_tbl, phase_tbl)                    # (rows_pad, lane_width)

    out = out_packed.reshape(rows_pad * groups, dim)               # metadata-only reshape
    if n_pad != n:
        out = out[:n]
    return out.reshape(*orig_shape, dim)


def _reference(x: jax.Array, dim: int, scale: float) -> jax.Array:
    """Pure-JAX reference mirroring the PyTorch forward."""
    inv_freq = jnp.exp(
        jnp.arange(0, dim, 2, dtype=jnp.float32) * (-math.log(10000.0) / dim))
    xi = x.astype(jnp.float32) * scale + 1.0
    sinusoid_in = jnp.outer(xi.reshape(-1), inv_freq)
    pos_emb = jnp.concatenate([jnp.sin(sinusoid_in), jnp.cos(sinusoid_in)], axis=-1)
    return pos_emb.reshape(*x.shape, dim)


if __name__ == "__main__":
    dim = 32          # embedding dimension (even, divides 128 -> packed path)
    scale = 1000.0    # typical diffusion time scale

    # Batch of 8 scalar timesteps in [0, 1).
    key = jax.random.PRNGKey(0)
    t = jax.random.uniform(key, (8,), dtype=jnp.float32)
    out = jax.block_until_ready(time_embedding(t, dim, scale))
    ref = _reference(t, dim, scale)
    assert out.shape == (8, dim), out.shape
    assert jnp.allclose(out, ref, atol=1e-3, rtol=1e-3), "mismatch vs reference"

    # Multi-dim input (reshape path) with N not a multiple of the packing factor.
    t2 = jax.random.uniform(jax.random.PRNGKey(1), (2, 3), dtype=jnp.float32)
    out2 = jax.block_until_ready(time_embedding(t2, dim, scale))
    ref2 = _reference(t2, dim, scale)
    assert out2.shape == (2, 3, dim), out2.shape
    assert jnp.allclose(out2, ref2, atol=1e-3, rtol=1e-3), "mismatch (2-D input)"

    # dim >= 128 path (no packing; lane width == dim, still a single sin pass).
    t3 = jax.random.uniform(jax.random.PRNGKey(2), (8,), dtype=jnp.float32)
    out3 = jax.block_until_ready(time_embedding(t3, 128, scale))
    ref3 = _reference(t3, 128, scale)
    assert out3.shape == (8, 128), out3.shape
    assert jnp.allclose(out3, ref3, atol=1e-3, rtol=1e-3), "mismatch (dim=128)"

    print("KERNEL_OK")
</pallas_src>

<mosaic_0001>
module attributes {stable_mosaic.version = 11 : i64} {
  func.func @_time_embedding_kernel(%arg0: i32, %arg1: memref<8x4xf32, #tpu.memory_space<vmem>>, %arg2: memref<4x128xf32, #tpu.memory_space<vmem>>, %arg3: memref<1x128xf32, #tpu.memory_space<vmem>>, %arg4: memref<8x128xf32, #tpu.memory_space<vmem>>) attributes {dimension_semantics = [#tpu.dimension_semantics<parallel>], iteration_bounds = array<i64: 1>, scalar_prefetch = 0 : i64, scratch_operands = 0 : i64, tpu.core_type = #tpu.core_type<tc>, window_params = [{transform_indices = @transform_0, window_bounds = array<i64: 8, 4>}, {pipeline_mode = #tpu.pipeline_mode<synchronous>, transform_indices = @transform_1, window_bounds = array<i64: 4, 128>}, {pipeline_mode = #tpu.pipeline_mode<synchronous>, transform_indices = @transform_2, window_bounds = array<i64: 1, 128>}, {transform_indices = @transform_3, window_bounds = array<i64: 8, 128>}]} {
    %c0 = arith.constant 0 : index
    %c0_0 = arith.constant 0 : index
    %0 = vector.load %arg1[%c0, %c0_0] : memref<8x4xf32, #tpu.memory_space<vmem>>, vector<8x4xf32>
    %cst = arith.constant 1.000000e+03 : f32
    %1 = vector.broadcast %cst : f32 to vector<8x4xf32>
    %2 = arith.mulf %0, %1 : vector<8x4xf32>
    %cst_1 = arith.constant 1.000000e+00 : f32
    %3 = vector.broadcast %cst_1 : f32 to vector<8x4xf32>
    %4 = arith.addf %2, %3 : vector<8x4xf32>
    %5 = vector.extract_strided_slice %4 {offsets = [0, 0], sizes = [8, 1], strides = [1, 1]} : vector<8x4xf32> to vector<8x1xf32>
    %c0_2 = arith.constant 0 : index
    %c0_3 = arith.constant 0 : index
    %6 = vector.load %arg2[%c0_2, %c0_3] : memref<4x128xf32, #tpu.memory_space<vmem>>, vector<1x128xf32>
    %7 = vector.broadcast %5 : vector<8x1xf32> to vector<8x128xf32>
    %8 = vector.broadcast %6 : vector<1x128xf32> to vector<8x128xf32>
    %9 = arith.mulf %7, %8 : vector<8x128xf32>
    %10 = vector.extract_strided_slice %4 {offsets = [0, 1], sizes = [8, 1], strides = [1, 1]} : vector<8x4xf32> to vector<8x1xf32>
    %c1 = arith.constant 1 : index
    %c0_4 = arith.constant 0 : index
    %11 = vector.load %arg2[%c1, %c0_4] : memref<4x128xf32, #tpu.memory_space<vmem>>, vector<1x128xf32>
    %12 = vector.broadcast %10 : vector<8x1xf32> to vector<8x128xf32>
    %13 = vector.broadcast %11 : vector<1x128xf32> to vector<8x128xf32>
    %14 = arith.mulf %12, %13 : vector<8x128xf32>
    %15 = arith.addf %9, %14 : vector<8x128xf32>
    %16 = vector.extract_strided_slice %4 {offsets = [0, 2], sizes = [8, 1], strides = [1, 1]} : vector<8x4xf32> to vector<8x1xf32>
    %c2 = arith.constant 2 : index
    %c0_5 = arith.constant 0 : index
    %17 = vector.load %arg2[%c2, %c0_5] : memref<4x128xf32, #tpu.memory_space<vmem>>, vector<1x128xf32>
    %18 = vector.broadcast %16 : vector<8x1xf32> to vector<8x128xf32>
    %19 = vector.broadcast %17 : vector<1x128xf32> to vector<8x128xf32>
    %20 = arith.mulf %18, %19 : vector<8x128xf32>
    %21 = arith.addf %15, %20 : vector<8x128xf32>
    %22 = vector.extract_strided_slice %4 {offsets = [0, 3], sizes = [8, 1], strides = [1, 1]} : vector<8x4xf32> to vector<8x1xf32>
    %c3 = arith.constant 3 : index
    %c0_6 = arith.constant 0 : index
    %23 = vector.load %arg2[%c3, %c0_6] : memref<4x128xf32, #tpu.memory_space<vmem>>, vector<1x128xf32>
    %24 = vector.broadcast %22 : vector<8x1xf32> to vector<8x128xf32>
    %25 = vector.broadcast %23 : vector<1x128xf32> to vector<8x128xf32>
    %26 = arith.mulf %24, %25 : vector<8x128xf32>
    %27 = arith.addf %21, %26 : vector<8x128xf32>
    %c0_7 = arith.constant 0 : index
    %c0_8 = arith.constant 0 : index
    %28 = vector.load %arg3[%c0_7, %c0_8] : memref<1x128xf32, #tpu.memory_space<vmem>>, vector<1x128xf32>
    %29 = vector.broadcast %28 : vector<1x128xf32> to vector<8x128xf32>
    %30 = arith.addf %27, %29 : vector<8x128xf32>
    %31 = math.sin %30 : vector<8x128xf32>
    %c0_9 = arith.constant 0 : index
    %c0_10 = arith.constant 0 : index
    %32 = vector.load %arg4[%c0_9, %c0_10] : memref<8x128xf32, #tpu.memory_space<vmem>>, vector<8x128xf32>
    tpu.vector_store %arg4[%c0_9, %c0_10], %31 {strides = array<i32>} : memref<8x128xf32, #tpu.memory_space<vmem>>, vector<8x128xf32>,
    return
  }
  func.func @transform_0(%arg0: i32) -> (i32, i32) {
    %c0_i32 = arith.constant 0 : i32
    %c0_i32_0 = arith.constant 0 : i32
    return %arg0, %c0_i32 : i32, i32
  }
  func.func @transform_1(%arg0: i32) -> (i32, i32) {
    %c0_i32 = arith.constant 0 : i32
    %c0_i32_0 = arith.constant 0 : i32
    %c0_i32_1 = arith.constant 0 : i32
    return %c0_i32, %c0_i32_0 : i32, i32
  }
  func.func @transform_2(%arg0: i32) -> (i32, i32) {
    %c0_i32 = arith.constant 0 : i32
    %c0_i32_0 = arith.constant 0 : i32
    %c0_i32_1 = arith.constant 0 : i32
    return %c0_i32, %c0_i32_0 : i32, i32
  }
  func.func @transform_3(%arg0: i32) -> (i32, i32) {
    %c0_i32 = arith.constant 0 : i32
    %c0_i32_0 = arith.constant 0 : i32
    return %arg0, %c0_i32 : i32, i32
  }
}

</mosaic_0001>

<bundles_post_ra>
// kernel: tpu_custom_call.1
= control target key start
LH: loop header
LB: loop body
LE: loop exit
PB: predicated region body
PF: predicated region fallthrough
CT: control target
= control target key end

     0   :  { %v246_v1 = vmov 0   ;;  %v247_v3 = vmov 2   ;;  %s328_s0 = inlined_call_operand.vmem [shape: f32[8,4], index: 0, kind: input, shape index: {}]   ;;  %s329_s1 = inlined_call_operand.vmem [shape: f32[4,128], index: 1, kind: input, shape index: {}]   ;;  %s330_s2 = inlined_call_operand.vmem [shape: f32[1,128], index: 2, kind: input, shape index: {}]   ;;  %s331_s3 = inlined_call_operand.hbm [shape: f32[8,128], index: 3, kind: output, shape index: {}]  }
   0x1   :  { %v15_v0 = vld [vmem:[%s328_s0] sm:$0xff]  ;;  %213 = vset.pattern.permute.xlu0 %v246_v1  ;;  %215 = vset.pattern.permute.xlu1 %v247_v3 }
   0x2   :  { %v16_v2 = vmul.f32 1000.0, %v15_v0 }
   0x3   :  { %8 = vsyncpa [#allocation3], 0  ;;  %v248_v5 = vmov 1   ;;  %v249_v6 = vmov 3   ;;  %v189_v9 = vld [vmem:[%s329_s1] ss:$0 sm:$0xff] }
   0x4   :  { %v17_v4 = vadd.f32 1.0, %v16_v2  ;;  %v190_v10 = vld [vmem:[%s329_s1 + $0x1] ss:$0 sm:$0xff]  ;;  %v191_v11 = vld [vmem:[%s329_s1 + $0x2] ss:$0 sm:$0xff] }
   0x5   :  { %v192_v13 = vld [vmem:[%s329_s1 + $0x3] ss:$0 sm:$0xff]  ;;  %v193_v21 = vld [vmem:[%s330_s2] ss:$0 sm:$0xff]  ;;  %v250_v34 = vmov 683565275  }
   0x6   :  { %21 = vperm.xlu0 %213, %v17_v4   ;;  %42 = vperm.xlu1 %215, %v17_v4   ;;  %v251_v36 = vmov 2475754826   ;;  %v252_v39 = vmov 2131351028   ;;  %v253_v42 = vmov 2102212464  }
   0x7   :  { %v254_v45 = vmov 920167782   ;;  %v255_v48 = vmov 1326507024   ;;  %s256_s1 = smov [#allocation2]  }
   0x8   :  { %s181_s2 = sshll.u32 %s256_s1, 4  ;;  %s182_s2 = int_to_ptr.vmem [resolvable:$true] %s181_s2 }
   0x9   :  { %s222_s23 = scalar_lea.vmem %s182_s2, 128  ;;  %p227_p1 = scmp.lt.s32.totalorder %s182_s2, %s182_s2 }
   0xa   :  { %214 = vset.pattern.permute.xlu0 %v248_v5  ;;  %216 = vset.pattern.permute.xlu1 %v249_v6  ;;  %p223_p0 = scmp.ne.s32.totalorder %s182_s2, %s222_s23  ;;  %p228_p2 = scmp.lt.s32.totalorder %s222_s23, %s222_s23 }
   0xb   :  { %31 = vperm.xlu0 %214, %v17_v4   ;;  %53 = vperm.xlu1 %216, %v17_v4  }
   0xc   :  { %p229_p3 = por %p228_p2, %p227_p1 }
   0xe   :  { %p230_p4 = pnand %p229_p3, %p223_p0 }
   0xf   :  { %217 = vset.pattern.permute.xlu0 %v249_v6 }
  0x85   :  { %v22_v7 = vpop.permute.xlu0 %21  ;;  %v43_v8 = vpop.permute.xlu1 %42 }
  0x86   :  { %v28_v15 = vmul.f32 %v189_v9, %v22_v7  ;;  %v49_v17 = vmul.f32 %v191_v11, %v43_v8 }
  0x8a   :  { %v32_v12 = vpop.permute.xlu0 %31  ;;  %v54_v14 = vpop.permute.xlu1 %53 }
  0x8b   :  { %v38_v16 = vmul.f32 %v190_v10, %v32_v12  ;;  %v60_v19 = vmul.f32 %v192_v13, %v54_v14 }
  0x8d   :  { %v39_v18 = vadd.f32 %v38_v16, %v28_v15 }
  0x8f   :  { %v50_v20 = vadd.f32 %v49_v17, %v39_v18 }
  0x91   :  { %v61_v22 = vadd.f32 %v60_v19, %v50_v20 }
  0x93   :  { %v295_v23 = vadd.f32 %v193_v21, %v61_v22 }
  0x95   :  { %v73_v24 = vand.u32 2139095040, %v295_v23  ;;  %v70_v28 = vand.u32 2147483647, %v295_v23  ;;  %vm72_vm7 = vcmp.lt.s32.totalorder %v295_v23, 0  ;;  %vm162_vm12 = vweird.f32 %v295_v23 }
  0x97   :  { %v74_v25 = vshrl.u32 %v73_v24, 23  ;;  %v77_v32 = vand.u32 8388607, %v70_v28  ;;  %vm71_vm8 = vcmp.le.f32.partialorder %v70_v28, 0.7853982 }
  0x99   :  { %v194_v26 = vadd.s32 4294967169, %v74_v25  ;;  %v78_v50 = vor.u32 8388608, %v77_v32 }
  0x9b   :  { %v80_v27 = vadd.s32 1, %v194_v26  ;;  %v118_v0 = vshll.u32 %v78_v50, 8 }
  0x9d   :  { %vm81_vm0 = vcmp.gt.s32.totalorder %v80_v27, 0 }
  0x9e   :  { %v82_v29 = vsel %vm81_vm0, %v80_v27, 0 }
  0x9f   :  { %v84_v30 = vand.u32 31, %v82_v29  ;;  %v83_v33 = vshrl.u32 %v82_v29, 5 }
  0xa1   :  { %v85_v31 = vsub.s32 32, %v84_v30  ;;  %v87_v35 = vshll.u32 %v250_v34, %v84_v30  ;;  %v90_v37 = vshll.u32 %v251_v36, %v84_v30  ;;  %v93_v41 = vshll.u32 %v252_v39, %v84_v30 }
  0xa2   :  { %v96_v44 = vshll.u32 %v253_v42, %v84_v30  ;;  %v99_v47 = vshll.u32 %v254_v45, %v84_v30  ;;  %vm102_vm1 = vcmp.lt.s32.totalorder %v83_v33, 1  ;;  %vm105_vm2 = vcmp.lt.s32.totalorder %v83_v33, 4 }
  0xa3   :  { %v88_v38 = vshrl.u32 %v251_v36, %v85_v31  ;;  %v91_v40 = vshrl.u32 %v252_v39, %v85_v31  ;;  %v94_v43 = vshrl.u32 %v253_v42, %v85_v31  ;;  %v97_v46 = vshrl.u32 %v254_v45, %v85_v31 }
  0xa4   :  { %v100_v49 = vshrl.u32 %v255_v48, %v85_v31  ;;  %v86_v59 = vshrl.u32 %v250_v34, %v85_v31  ;;  %vm104_vm3 = vcmp.lt.s32.totalorder %v83_v33, 3  ;;  %vm103_vm4 = vcmp.lt.s32.totalorder %v83_v33, 2 }
  0xa5   :  { %v89_v51 = vor.u32 %v88_v38, %v87_v35  ;;  %v92_v52 = vor.u32 %v91_v40, %v90_v37  ;;  %v95_v53 = vor.u32 %v94_v43, %v93_v41  ;;  %v98_v54 = vor.u32 %v97_v46, %v96_v44 }
  0xa6   :  { %v101_v55 = vor.u32 %v100_v49, %v99_v47 }
  0xa7   :  { %v107_v56 = vsel %vm105_vm2, %v95_v53, 2102212464  ;;  %v110_v57 = vsel %vm102_vm1, %v89_v51, %v92_v52  ;;  %v114_v58 = vsel %vm102_vm1, %v92_v52, %v95_v53  ;;  %v111_v60 = vsel %vm105_vm2, %v98_v54, 920167782 }
  0xa8   :  { %v115_v61 = vsel %vm105_vm2, %v101_v55, 1326507024  ;;  %v112_v62 = vsel %vm104_vm3, %v95_v53, %v111_v60  ;;  %v106_v1 = vsel %vm102_vm1, %v86_v59, %v89_v51  ;;  %v108_v2 = vsel %vm104_vm3, %v92_v52, %v107_v56 }
  0xa9   :  { %v116_v63 = vsel %vm104_vm3, %v98_v54, %v115_v61  ;;  %v113_v3 = vsel %vm103_vm4, %v110_v57, %v112_v62  ;;  %v109_v9 = vsel %vm103_vm4, %v106_v1, %v108_v2 }
  0xaa   :  { %v117_v4 = vsel %vm103_vm4, %v114_v58, %v116_v63  ;;  %v304_v7 = vmul.u32.u64.low %v118_v0, %v113_v3  ;;  %v305_v8 = vmul.u32.u64.high %v118_v0, %v113_v3, %v304_v7  ;;  %v125_v11 = vmul.u32 %v118_v0, %v109_v9 }
  0xab   :  { %v301_v5 = vmul.u32.u64.low %v118_v0, %v117_v4  ;;  %v302_v6 = vmul.u32.u64.high %v118_v0, %v117_v4, %v301_v5 }
  0xac   :  { %v128_v10 = vadd.s32 1, %v305_v8 }
  0xad   :  { %vm127_vm5 = vc.u32 %v302_v6, %v304_v7  ;;  %v126_v24 = vadd.s32 %v304_v7, %v302_v6 }
  0xae   :  { %v129_v12 = vsel %vm127_vm5, %v128_v10, %v305_v8 }
  0xaf   :  { %v130_v13 = vadd.s32 %v129_v12, %v125_v11 }
  0xb1   :  { %v131_v14 = vadd.s32 536870912, %v130_v13 }
  0xb3   :  { %v132_v15 = vshrl.u32 %v131_v14, 30 }
  0xb5   :  { %v133_v16 = vshll.u32 %v132_v15, 30  ;;  %v156_v37 = vsub.s32 4, %v132_v15 }
  0xb7   :  { %v134_v17 = vsub.s32 %v130_v13, %v133_v16  ;;  %v157_v40 = vsel %vm72_vm7, %v156_v37, %v132_v15 }
  0xb8   :  { %v159_v42 = vsel %vm71_vm8, 0, %v157_v40 }
  0xb9   :  { %v136_v18 = vsub.s32 0, %v134_v17  ;;  %v163_v43 = vadd.s32 3, %v159_v42 }
  0xbb   :  { %v195_v19 = vmin.u32 %v136_v18, %v134_v17  ;;  %v164_v44 = vand.u32 3, %v163_v43 }
  0xbd   :  { %v138_v20 = vclz %v195_v19  ;;  %vm169_vm9 = vcmp.eq.s32.totalorder %v164_v44, 2  ;;  %vm166_vm10 = vcmp.eq.s32.totalorder %v164_v44, 0  ;;  %vm165_vm11 = vcmp.lt.s32.totalorder %v164_v44, 2 }
  0xbf   :  { %v196_v21 = vadd.s32 4294967294, %v138_v20 }
  0xc1   :  { %vm197_vm6 = vcmp.lt.s32.totalorder %v196_v21, 0 }
  0xc2   :  { %v141_v22 = vsel %vm197_vm6, 0, %v196_v21 }
  0xc3   :  { %v142_v25 = vsub.s32 32, %v141_v22  ;;  %v146_v26 = vsub.s32 4294967266, %v141_v22  ;;  %v143_v27 = vshll.u32 %v134_v17, %v141_v22 }
  0xc5   :  { %v144_v29 = vshrl.u32 %v126_v24, %v142_v25  ;;  %v147_v30 = vadd.s32 127, %v146_v26 }
  0xc7   :  { %v145_v31 = vor.u32 %v144_v29, %v143_v27  ;;  %v148_v32 = vshll.u32 %v147_v30, 23 }
  0xc9   :  { %v149_v33 = vor.u32 4788187, %v148_v32  ;;  %v152_v35 = vcvt.s32.f32 %v145_v31 }
  0xcb   :  { %v150_v34 = vand.u32 2147483647, %v149_v33 }
  0xcd   :  { %v153_v36 = vmul.f32 %v152_v35, %v150_v34 }
  0xcf   :  { %v154_v38 = vxor.u32 2147483648, %v153_v36 }
  0xd1   :  { %v155_v39 = vsel %vm72_vm7, %v154_v38, %v153_v36 }
  0xd2   :  { %v158_v41 = vsel %vm71_vm8, %v295_v23, %v155_v39 }
  0xd3   :  { %218 = vcosq.f32 %v158_v41 }
  0xd4   :  { %220 = vsinq.f32 %v158_v41 }
  0xdd   :  { %v219_v45 = vpop.eup %218 }
  0xde   :  { %v221_v46 = vpop.eup %220  ;;  %v170_v47 = vxor.u32 2147483648, %v219_v45 }
  0xdf   :  { %v167_v48 = vxor.u32 2147483648, %v221_v46 }
  0xe0   :  { %v171_v49 = vsel %vm169_vm9, %v170_v47, %v221_v46 }
  0xe1   :  { %v168_v28 = vsel %vm166_vm10, %v219_v45, %v167_v48 }
  0xe2   :  { %v172_v50 = vsel %vm165_vm11, %v168_v28, %v171_v49 }
  0xe3   :  { %v173_v51 = vsel %vm162_vm12, nan, %v172_v50 }
  0xe4   :  { %174 = vst [vmem:[#allocation2] sm:$0xff] %v173_v51 }
  0xe5   :  { %233 = shalt.err (!%p230_p4)
}
  0xe6   :  { %s234_s26 = scalar_lea.hbm %s331_s3, 128 }
  0xe7   :  { %p235_p5 = scmp.ne.s32.totalorder %s331_s3, %s234_s26  ;;  %p238_p6 = scmp.lt.u32.totalorder %s234_s26, %s331_s3 }
  0xe9   :  { %p240_p7 = pnand %p238_p6, %p235_p5 }
  0xeb   :  { %243 = shalt.err (!%p240_p7)
}
  0xec   :  { %184 = dma.vmem_to_hbm [thread:$0]  %s182_s2, 128, %s331_s3, [#allocation3]  }
  0xed   :  { %244 = dma.done.wait [#allocation3], 128  }
  0xee   :  { %245 = vsyncadd [#allocation3], 4294967168 }
  0xef   :  { %188 = vsyncpa [#allocation3], 1 }

</bundles_post_ra>
